<compile_context>
chip_gen: v5e
topology: v5e:2x2
jax: 0.10.0
libtpu: 0.0.40
codegen_flags: <defaults>
</compile_context>

<pallas_src>
import functools
import math

import jax
import jax.numpy as jnp
from jax.experimental import pallas as pl
from jax.experimental.pallas import tpu as pltpu

_NEG = -1e30  # finite mask sentinel (no -inf => no NaN on padded rows)


def _round_up(x, m):
    return (x + m - 1) // m * m


def _pick_tile(T, prefer=(256, 128, 64, 32, 16, 8)):
    """Largest preferred tile that divides T; otherwise a tile we can pad T to."""
    for t in prefer:
        if t <= T and T % t == 0:
            return t
    Tp = _round_up(T, 8)
    for t in prefer:
        if t <= Tp:
            return t
    return Tp


def _flash_kernel(q_ref, k_ref, v_ref, o_ref, m_sc, l_sc, acc_sc, *, tile, scale):
    """Grid = (batch, q_tile, kv_tile); kv_tile is the 'arbitrary' reduction axis.

    Inputs are pre-projected, head-major bf16 blocks of shape (1, H, tile, d).
    Only the online-softmax attention loop lives in the kernel.
    """
    qi = pl.program_id(1)
    ki = pl.program_id(2)

    @pl.when(ki == 0)
    def _init():
        m_sc[...] = jnp.full_like(m_sc, _NEG)
        l_sc[...] = jnp.zeros_like(l_sc)
        acc_sc[...] = jnp.zeros_like(acc_sc)

    def _attend(diagonal_tile):
        q_h = q_ref[0]                                    # (H, tile, d) bf16
        k_h = k_ref[0]                                    # (H, tile, d) bf16
        v_h = v_ref[0]                                    # (H, tile, d) bf16
        # Head-batched scores, f32 accumulation on the MXU.
        s = jnp.einsum('hqd,hkd->hqk', q_h, k_h,
                       preferred_element_type=jnp.float32) * scale
        if diagonal_tile:
            # Causal mask is only needed on the diagonal tile (tq == tkv, qi == ki,
            # identical row/col offsets => col <= row).
            row = jax.lax.broadcasted_iota(jnp.int32, (tile, tile), 0)
            col = jax.lax.broadcasted_iota(jnp.int32, (tile, tile), 1)
            s = jnp.where((col <= row)[None, :, :], s, _NEG)
        # Online-softmax update (f32 VPU/EUP math; only MXU operands are bf16).
        m_prev = m_sc[...]                                # (H, tile, 1)
        m_new = jnp.maximum(m_prev, jnp.max(s, axis=-1, keepdims=True))
        alpha = jnp.exp(m_prev - m_new)
        p = jnp.exp(s - m_new)                            # (H, tile, tile) f32
        l_sc[...] = alpha * l_sc[...] + jnp.sum(p, axis=-1, keepdims=True)
        pv = jnp.einsum('hqk,hkd->hqd', p.astype(jnp.bfloat16), v_h,
                        preferred_element_type=jnp.float32)
        acc_sc[...] = alpha * acc_sc[...] + pv
        m_sc[...] = m_new

    @pl.when(ki < qi)            # fully-unmasked sub-diagonal tiles (no mask work)
    def _body():
        _attend(False)

    @pl.when(ki == qi)           # diagonal tile: mask, then finalize this q tile
    def _diag_and_finalize():
        _attend(True)
        inv_l = pl.reciprocal(l_sc[...], approx=True)     # (H, tile, 1)
        o_ref[0] = (acc_sc[...] * inv_l).astype(o_ref.dtype)
    # ki > qi: pure no-op — the KV index_map is clamped to qi, so no DMA either.
    # The output block index is constant across ki, so the deferred writeback
    # still carries the value stored at ki == qi.


def multi_head_attention(x, params, *, n_heads, head_size):
    """x: (B, T, C) float32.  params: dict of stacked per-head weights."""
    B, T, C = x.shape
    H, d = n_heads, head_size
    assert H * d == C
    scale = C ** (-0.5)   # reference Head.forward scales by n_embd ** -0.5

    # --- hoisted projections: full-width XLA matmuls, head-major output -----
    q = jnp.einsum('btc,hcd->bhtd', x, params["wq"]) + params["bq"][None]
    k = jnp.einsum('btc,hcd->bhtd', x, params["wk"]) + params["bk"][None]
    v = jnp.einsum('btc,hcd->bhtd', x, params["wv"]) + params["bv"][None]

    tile = _pick_tile(T)
    Tp = _round_up(T, tile)
    if Tp != T:
        # Pad sequence; causal mask keeps real queries away from padded keys,
        # padded query rows are sliced off below.
        pad = ((0, 0), (0, 0), (0, Tp - T), (0, 0))
        q, k, v = (jnp.pad(z, pad) for z in (q, k, v))
    qb, kb, vb = (z.astype(jnp.bfloat16) for z in (q, k, v))
    num_tiles = Tp // tile

    kernel = functools.partial(_flash_kernel, tile=tile, scale=scale)

    heads = pl.pallas_call(
        kernel,
        out_shape=jax.ShapeDtypeStruct((B, H, Tp, d), jnp.float32),
        grid_spec=pltpu.PrefetchScalarGridSpec(
            num_scalar_prefetch=0,
            grid=(B, num_tiles, num_tiles),
            in_specs=[
                # Q block: index constant across ki -> DMA'd once per q tile.
                pl.BlockSpec((1, H, tile, d), lambda b, qi, ki: (b, 0, qi, 0)),
                # K/V blocks: clamp index so masked (ki > qi) steps issue no DMA.
                pl.BlockSpec((1, H, tile, d),
                             lambda b, qi, ki: (b, 0, jnp.minimum(ki, qi), 0)),
                pl.BlockSpec((1, H, tile, d),
                             lambda b, qi, ki: (b, 0, jnp.minimum(ki, qi), 0)),
            ],
            out_specs=pl.BlockSpec((1, H, tile, d),
                                   lambda b, qi, ki: (b, 0, qi, 0)),
            scratch_shapes=[
                pltpu.VMEM((H, tile, 1), jnp.float32),    # running max
                pltpu.VMEM((H, tile, 1), jnp.float32),    # running sum
                pltpu.VMEM((H, tile, d), jnp.float32),    # output accumulator
            ],
        ),
        compiler_params=pltpu.CompilerParams(
            dimension_semantics=("parallel", "parallel", "arbitrary")),
    )(qb, kb, vb)

    heads = heads[:, :, :T, :]                            # drop padded rows
    cat = jnp.transpose(heads, (0, 2, 1, 3)).reshape(B, T, C)
    out = cat @ params["wp"] + params["bp"]               # output projection (XLA)
    return out.astype(x.dtype)


def _reference(x, params, *, n_heads, head_size):
    """Pure-JAX f32 reference mirroring Head.forward + concat + proj."""
    B, T, C = x.shape
    scale = C ** (-0.5)
    tril = jnp.tril(jnp.ones((T, T), dtype=bool))
    outs = []
    for h in range(n_heads):
        q = x @ params["wq"][h] + params["bq"][h]
        k = x @ params["wk"][h] + params["bk"][h]
        v = x @ params["wv"][h] + params["bv"][h]
        wei = (q @ jnp.swapaxes(k, -1, -2)) * scale
        wei = jnp.where(tril, wei, -jnp.inf)
        wei = jax.nn.softmax(wei, axis=-1)
        outs.append(wei @ v)
    cat = jnp.concatenate(outs, axis=-1)
    return cat @ params["wp"] + params["bp"]


def init_params(key, n_heads, head_size, n_embd):
    """Deterministic nn.Linear-style init: U(-1/sqrt(fan_in), 1/sqrt(fan_in))."""
    ks = jax.random.split(key, 8)
    lim = 1.0 / math.sqrt(n_embd)
    u = lambda k, shape: jax.random.uniform(k, shape, jnp.float32, -lim, lim)
    return {
        "wq": u(ks[0], (n_heads, n_embd, head_size)),
        "bq": u(ks[1], (n_heads, 1, head_size)),
        "wk": u(ks[2], (n_heads, n_embd, head_size)),
        "bk": u(ks[3], (n_heads, 1, head_size)),
        "wv": u(ks[4], (n_heads, n_embd, head_size)),
        "bv": u(ks[5], (n_heads, 1, head_size)),
        "wp": u(ks[6], (n_embd, n_embd)),
        "bp": u(ks[7], (1, n_embd)),
    }


if __name__ == "__main__":
    B, T = 2, 8
    n_heads, head_size = 4, 8
    n_embd = n_heads * head_size          # 32

    key = jax.random.PRNGKey(0)
    kx, kp = jax.random.split(key)
    x = jax.random.normal(kx, (B, T, n_embd), dtype=jnp.float32)
    params = init_params(kp, n_heads, head_size, n_embd)

    out = multi_head_attention(x, params, n_heads=n_heads, head_size=head_size)
    out = jax.block_until_ready(out)

    ref = _reference(x, params, n_heads=n_heads, head_size=head_size)
    assert out.shape == (B, T, n_embd)
    # bf16 MXU operands + approx reciprocal => bf16-appropriate tolerance.
    assert jnp.allclose(out, ref, atol=3e-2, rtol=3e-2), "mismatch vs reference"

    print("KERNEL_OK")
</pallas_src>

<mosaic_0001>
module attributes {stable_mosaic.version = 11 : i64} {
  func.func @_flash_kernel(%arg0: i32, %arg1: i32, %arg2: i32, %arg3: memref<1x4x8x8xbf16, #tpu.memory_space<vmem>>, %arg4: memref<1x4x8x8xbf16, #tpu.memory_space<vmem>>, %arg5: memref<1x4x8x8xbf16, #tpu.memory_space<vmem>>, %arg6: memref<1x4x8x8xf32, #tpu.memory_space<vmem>>, %arg7: memref<4x8x1xf32, #tpu.memory_space<vmem>>, %arg8: memref<4x8x1xf32, #tpu.memory_space<vmem>>, %arg9: memref<4x8x8xf32, #tpu.memory_space<vmem>>) attributes {dimension_semantics = [#tpu.dimension_semantics<parallel>, #tpu.dimension_semantics<parallel>, #tpu.dimension_semantics<arbitrary>], iteration_bounds = array<i64: 2, 1, 1>, scalar_prefetch = 0 : i64, scratch_operands = 3 : i64, tpu.core_type = #tpu.core_type<tc>, window_params = [{transform_indices = @transform_0, window_bounds = array<i64: 1, 4, 8, 8>}, {transform_indices = @transform_1, window_bounds = array<i64: 1, 4, 8, 8>}, {transform_indices = @transform_2, window_bounds = array<i64: 1, 4, 8, 8>}, {transform_indices = @transform_3, window_bounds = array<i64: 1, 4, 8, 8>}]} {
    %c0_i32 = arith.constant 0 : i32
    %0 = arith.cmpi eq, %arg2, %c0_i32 : i32
    %1 = arith.extui %0 : i1 to i32
    %c0_i32_0 = arith.constant 0 : i32
    %2 = arith.cmpi ne, %1, %c0_i32_0 : i32
    scf.if %2 {
      %cst = arith.constant -1.000000e+30 : f32
      %9 = vector.broadcast %cst : f32 to vector<4x8x1xf32>
      %c0 = arith.constant 0 : index
      %c0_3 = arith.constant 0 : index
      %c0_4 = arith.constant 0 : index
      %10 = vector.load %arg7[%c0, %c0_3, %c0_4] : memref<4x8x1xf32, #tpu.memory_space<vmem>>, vector<4x8x1xf32>
      tpu.vector_store %arg7[%c0, %c0_3, %c0_4], %9 {strides = array<i32>} : memref<4x8x1xf32, #tpu.memory_space<vmem>>, vector<4x8x1xf32>,
      %cst_5 = arith.constant 0.000000e+00 : f32
      %11 = vector.broadcast %cst_5 : f32 to vector<4x8x1xf32>
      %c0_6 = arith.constant 0 : index
      %c0_7 = arith.constant 0 : index
      %c0_8 = arith.constant 0 : index
      %12 = vector.load %arg8[%c0_6, %c0_7, %c0_8] : memref<4x8x1xf32, #tpu.memory_space<vmem>>, vector<4x8x1xf32>
      tpu.vector_store %arg8[%c0_6, %c0_7, %c0_8], %11 {strides = array<i32>} : memref<4x8x1xf32, #tpu.memory_space<vmem>>, vector<4x8x1xf32>,
      %cst_9 = arith.constant 0.000000e+00 : f32
      %13 = vector.broadcast %cst_9 : f32 to vector<4x8x8xf32>
      %c0_10 = arith.constant 0 : index
      %c0_11 = arith.constant 0 : index
      %c0_12 = arith.constant 0 : index
      %14 = vector.load %arg9[%c0_10, %c0_11, %c0_12] : memref<4x8x8xf32, #tpu.memory_space<vmem>>, vector<4x8x8xf32>
      tpu.vector_store %arg9[%c0_10, %c0_11, %c0_12], %13 {strides = array<i32>} : memref<4x8x8xf32, #tpu.memory_space<vmem>>, vector<4x8x8xf32>,
    } else {
    }
    %3 = arith.cmpi slt, %arg2, %arg1 : i32
    %4 = arith.extui %3 : i1 to i32
    %c0_i32_1 = arith.constant 0 : i32
    %5 = arith.cmpi ne, %4, %c0_i32_1 : i32
    scf.if %5 {
      %c0 = arith.constant 0 : index
      %c0_3 = arith.constant 0 : index
      %c0_4 = arith.constant 0 : index
      %c0_5 = arith.constant 0 : index
      %9 = vector.load %arg3[%c0, %c0_3, %c0_4, %c0_5] : memref<1x4x8x8xbf16, #tpu.memory_space<vmem>>, vector<1x4x8x8xbf16>
      %10 = vector.shape_cast %9 : vector<1x4x8x8xbf16> to vector<4x8x8xbf16>
      %c0_6 = arith.constant 0 : index
      %c0_7 = arith.constant 0 : index
      %c0_8 = arith.constant 0 : index
      %c0_9 = arith.constant 0 : index
      %11 = vector.load %arg4[%c0_6, %c0_7, %c0_8, %c0_9] : memref<1x4x8x8xbf16, #tpu.memory_space<vmem>>, vector<1x4x8x8xbf16>
      %12 = vector.shape_cast %11 : vector<1x4x8x8xbf16> to vector<4x8x8xbf16>
      %c0_10 = arith.constant 0 : index
      %c0_11 = arith.constant 0 : index
      %c0_12 = arith.constant 0 : index
      %c0_13 = arith.constant 0 : index
      %13 = vector.load %arg5[%c0_10, %c0_11, %c0_12, %c0_13] : memref<1x4x8x8xbf16, #tpu.memory_space<vmem>>, vector<1x4x8x8xbf16>
      %14 = vector.shape_cast %13 : vector<1x4x8x8xbf16> to vector<4x8x8xbf16>
      "tpu.trace_start"() <{level = 10 : i32, message = "hqd,hkd->hqk"}> : () -> ()
      %cst = arith.constant dense<0.000000e+00> : vector<4x8x8xf32>
      %15 = tpu.matmul %10, %12, %cst {dimension_numbers = #tpu.dot_dimension_numbers<[2], [2], [1], [1], [0, 0, 0, 1, 1, 1], [0], [0]>} : vector<4x8x8xbf16>, vector<4x8x8xbf16>, vector<4x8x8xf32> -> vector<4x8x8xf32>
      "tpu.trace_stop"() : () -> ()
      %cst_14 = arith.constant 0.176776692 : f32
      %16 = vector.broadcast %cst_14 : f32 to vector<4x8x8xf32>
      %17 = arith.mulf %15, %16 : vector<4x8x8xf32>
      %c0_15 = arith.constant 0 : index
      %c0_16 = arith.constant 0 : index
      %c0_17 = arith.constant 0 : index
      %18 = vector.load %arg7[%c0_15, %c0_16, %c0_17] : memref<4x8x1xf32, #tpu.memory_space<vmem>>, vector<4x8x1xf32>
      %cst_18 = arith.constant dense<0xFF800000> : vector<4x8xf32>
      %19 = vector.multi_reduction <maximumf>, %17, %cst_18 [2] : vector<4x8x8xf32> to vector<4x8xf32>
      %20 = vector.shape_cast %19 : vector<4x8xf32> to vector<4x8x1xf32>
      %21 = arith.maximumf %18, %20 : vector<4x8x1xf32>
      %22 = arith.subf %18, %21 : vector<4x8x1xf32>
      %23 = math.exp %22 : vector<4x8x1xf32>
      %24 = vector.broadcast %21 : vector<4x8x1xf32> to vector<4x8x8xf32>
      %25 = arith.subf %17, %24 : vector<4x8x8xf32>
      %26 = math.exp %25 : vector<4x8x8xf32>
      %c0_19 = arith.constant 0 : index
      %c0_20 = arith.constant 0 : index
      %c0_21 = arith.constant 0 : index
      %27 = vector.load %arg8[%c0_19, %c0_20, %c0_21] : memref<4x8x1xf32, #tpu.memory_space<vmem>>, vector<4x8x1xf32>
      %28 = arith.mulf %23, %27 : vector<4x8x1xf32>
      %cst_22 = arith.constant dense<0.000000e+00> : vector<4x8xf32>
      %29 = vector.multi_reduction <add>, %26, %cst_22 [2] : vector<4x8x8xf32> to vector<4x8xf32>
      %30 = vector.shape_cast %29 : vector<4x8xf32> to vector<4x8x1xf32>
      %31 = arith.addf %28, %30 : vector<4x8x1xf32>
      %c0_23 = arith.constant 0 : index
      %c0_24 = arith.constant 0 : index
      %c0_25 = arith.constant 0 : index
      %32 = vector.load %arg8[%c0_23, %c0_24, %c0_25] : memref<4x8x1xf32, #tpu.memory_space<vmem>>, vector<4x8x1xf32>
      tpu.vector_store %arg8[%c0_23, %c0_24, %c0_25], %31 {strides = array<i32>} : memref<4x8x1xf32, #tpu.memory_space<vmem>>, vector<4x8x1xf32>,
      %33 = arith.truncf %26 : vector<4x8x8xf32> to vector<4x8x8xbf16>
      "tpu.trace_start"() <{level = 10 : i32, message = "hqk,hkd->hqd"}> : () -> ()
      %cst_26 = arith.constant dense<0.000000e+00> : vector<4x8x8xf32>
      %34 = tpu.matmul %33, %14, %cst_26 {dimension_numbers = #tpu.dot_dimension_numbers<[2], [1], [1], [2], [0, 0, 0, 1, 1, 2], [0], [0]>} : vector<4x8x8xbf16>, vector<4x8x8xbf16>, vector<4x8x8xf32> -> vector<4x8x8xf32>
      "tpu.trace_stop"() : () -> ()
      %c0_27 = arith.constant 0 : index
      %c0_28 = arith.constant 0 : index
      %c0_29 = arith.constant 0 : index
      %35 = vector.load %arg9[%c0_27, %c0_28, %c0_29] : memref<4x8x8xf32, #tpu.memory_space<vmem>>, vector<4x8x8xf32>
      %36 = vector.broadcast %23 : vector<4x8x1xf32> to vector<4x8x8xf32>
      %37 = arith.mulf %36, %35 : vector<4x8x8xf32>
      %38 = arith.addf %37, %34 : vector<4x8x8xf32>
      %c0_30 = arith.constant 0 : index
      %c0_31 = arith.constant 0 : index
      %c0_32 = arith.constant 0 : index
      %39 = vector.load %arg9[%c0_30, %c0_31, %c0_32] : memref<4x8x8xf32, #tpu.memory_space<vmem>>, vector<4x8x8xf32>
      tpu.vector_store %arg9[%c0_30, %c0_31, %c0_32], %38 {strides = array<i32>} : memref<4x8x8xf32, #tpu.memory_space<vmem>>, vector<4x8x8xf32>,
      %c0_33 = arith.constant 0 : index
      %c0_34 = arith.constant 0 : index
      %c0_35 = arith.constant 0 : index
      %40 = vector.load %arg7[%c0_33, %c0_34, %c0_35] : memref<4x8x1xf32, #tpu.memory_space<vmem>>, vector<4x8x1xf32>
      tpu.vector_store %arg7[%c0_33, %c0_34, %c0_35], %21 {strides = array<i32>} : memref<4x8x1xf32, #tpu.memory_space<vmem>>, vector<4x8x1xf32>,
    } else {
    }
    %6 = arith.cmpi eq, %arg2, %arg1 : i32
    %7 = arith.extui %6 : i1 to i32
    %c0_i32_2 = arith.constant 0 : i32
    %8 = arith.cmpi ne, %7, %c0_i32_2 : i32
    scf.if %8 {
      %c0 = arith.constant 0 : index
      %c0_3 = arith.constant 0 : index
      %c0_4 = arith.constant 0 : index
      %c0_5 = arith.constant 0 : index
      %9 = vector.load %arg3[%c0, %c0_3, %c0_4, %c0_5] : memref<1x4x8x8xbf16, #tpu.memory_space<vmem>>, vector<1x4x8x8xbf16>
      %10 = vector.shape_cast %9 : vector<1x4x8x8xbf16> to vector<4x8x8xbf16>
      %c0_6 = arith.constant 0 : index
      %c0_7 = arith.constant 0 : index
      %c0_8 = arith.constant 0 : index
      %c0_9 = arith.constant 0 : index
      %11 = vector.load %arg4[%c0_6, %c0_7, %c0_8, %c0_9] : memref<1x4x8x8xbf16, #tpu.memory_space<vmem>>, vector<1x4x8x8xbf16>
      %12 = vector.shape_cast %11 : vector<1x4x8x8xbf16> to vector<4x8x8xbf16>
      %c0_10 = arith.constant 0 : index
      %c0_11 = arith.constant 0 : index
      %c0_12 = arith.constant 0 : index
      %c0_13 = arith.constant 0 : index
      %13 = vector.load %arg5[%c0_10, %c0_11, %c0_12, %c0_13] : memref<1x4x8x8xbf16, #tpu.memory_space<vmem>>, vector<1x4x8x8xbf16>
      %14 = vector.shape_cast %13 : vector<1x4x8x8xbf16> to vector<4x8x8xbf16>
      "tpu.trace_start"() <{level = 10 : i32, message = "hqd,hkd->hqk"}> : () -> ()
      %cst = arith.constant dense<0.000000e+00> : vector<4x8x8xf32>
      %15 = tpu.matmul %10, %12, %cst {dimension_numbers = #tpu.dot_dimension_numbers<[2], [2], [1], [1], [0, 0, 0, 1, 1, 1], [0], [0]>} : vector<4x8x8xbf16>, vector<4x8x8xbf16>, vector<4x8x8xf32> -> vector<4x8x8xf32>
      "tpu.trace_stop"() : () -> ()
      %cst_14 = arith.constant 0.176776692 : f32
      %16 = vector.broadcast %cst_14 : f32 to vector<4x8x8xf32>
      %17 = arith.mulf %15, %16 : vector<4x8x8xf32>
      %18 = tpu.iota {dimensions = array<i32: 0>} : vector<8x8xi32>
      %19 = tpu.iota {dimensions = array<i32: 1>} : vector<8x8xi32>
      %20 = arith.cmpi sle, %19, %18 : vector<8x8xi32>
      %21 = vector.shape_cast %20 : vector<8x8xi1> to vector<1x8x8xi1>
      %cst_15 = arith.constant -1.000000e+30 : f32
      %22 = vector.shape_cast %21 : vector<1x8x8xi1> to vector<1x8x8xi1>
      %23 = vector.broadcast %22 : vector<1x8x8xi1> to vector<4x8x8xi1>
      %24 = vector.broadcast %cst_15 : f32 to vector<4x8x8xf32>
      %25 = arith.select %23, %17, %24 : vector<4x8x8xi1>, vector<4x8x8xf32>
      %c0_16 = arith.constant 0 : index
      %c0_17 = arith.constant 0 : index
      %c0_18 = arith.constant 0 : index
      %26 = vector.load %arg7[%c0_16, %c0_17, %c0_18] : memref<4x8x1xf32, #tpu.memory_space<vmem>>, vector<4x8x1xf32>
      %cst_19 = arith.constant dense<0xFF800000> : vector<4x8xf32>
      %27 = vector.multi_reduction <maximumf>, %25, %cst_19 [2] : vector<4x8x8xf32> to vector<4x8xf32>
      %28 = vector.shape_cast %27 : vector<4x8xf32> to vector<4x8x1xf32>
      %29 = arith.maximumf %26, %28 : vector<4x8x1xf32>
      %30 = arith.subf %26, %29 : vector<4x8x1xf32>
      %31 = math.exp %30 : vector<4x8x1xf32>
      %32 = vector.broadcast %29 : vector<4x8x1xf32> to vector<4x8x8xf32>
      %33 = arith.subf %25, %32 : vector<4x8x8xf32>
      %34 = math.exp %33 : vector<4x8x8xf32>
      %c0_20 = arith.constant 0 : index
      %c0_21 = arith.constant 0 : index
      %c0_22 = arith.constant 0 : index
      %35 = vector.load %arg8[%c0_20, %c0_21, %c0_22] : memref<4x8x1xf32, #tpu.memory_space<vmem>>, vector<4x8x1xf32>
      %36 = arith.mulf %31, %35 : vector<4x8x1xf32>
      %cst_23 = arith.constant dense<0.000000e+00> : vector<4x8xf32>
      %37 = vector.multi_reduction <add>, %34, %cst_23 [2] : vector<4x8x8xf32> to vector<4x8xf32>
      %38 = vector.shape_cast %37 : vector<4x8xf32> to vector<4x8x1xf32>
      %39 = arith.addf %36, %38 : vector<4x8x1xf32>
      %c0_24 = arith.constant 0 : index
      %c0_25 = arith.constant 0 : index
      %c0_26 = arith.constant 0 : index
      %40 = vector.load %arg8[%c0_24, %c0_25, %c0_26] : memref<4x8x1xf32, #tpu.memory_space<vmem>>, vector<4x8x1xf32>
      tpu.vector_store %arg8[%c0_24, %c0_25, %c0_26], %39 {strides = array<i32>} : memref<4x8x1xf32, #tpu.memory_space<vmem>>, vector<4x8x1xf32>,
      %41 = arith.truncf %34 : vector<4x8x8xf32> to vector<4x8x8xbf16>
      "tpu.trace_start"() <{level = 10 : i32, message = "hqk,hkd->hqd"}> : () -> ()
      %cst_27 = arith.constant dense<0.000000e+00> : vector<4x8x8xf32>
      %42 = tpu.matmul %41, %14, %cst_27 {dimension_numbers = #tpu.dot_dimension_numbers<[2], [1], [1], [2], [0, 0, 0, 1, 1, 2], [0], [0]>} : vector<4x8x8xbf16>, vector<4x8x8xbf16>, vector<4x8x8xf32> -> vector<4x8x8xf32>
      "tpu.trace_stop"() : () -> ()
      %c0_28 = arith.constant 0 : index
      %c0_29 = arith.constant 0 : index
      %c0_30 = arith.constant 0 : index
      %43 = vector.load %arg9[%c0_28, %c0_29, %c0_30] : memref<4x8x8xf32, #tpu.memory_space<vmem>>, vector<4x8x8xf32>
      %44 = vector.broadcast %31 : vector<4x8x1xf32> to vector<4x8x8xf32>
      %45 = arith.mulf %44, %43 : vector<4x8x8xf32>
      %46 = arith.addf %45, %42 : vector<4x8x8xf32>
      %c0_31 = arith.constant 0 : index
      %c0_32 = arith.constant 0 : index
      %c0_33 = arith.constant 0 : index
      %47 = vector.load %arg9[%c0_31, %c0_32, %c0_33] : memref<4x8x8xf32, #tpu.memory_space<vmem>>, vector<4x8x8xf32>
      tpu.vector_store %arg9[%c0_31, %c0_32, %c0_33], %46 {strides = array<i32>} : memref<4x8x8xf32, #tpu.memory_space<vmem>>, vector<4x8x8xf32>,
      %c0_34 = arith.constant 0 : index
      %c0_35 = arith.constant 0 : index
      %c0_36 = arith.constant 0 : index
      %48 = vector.load %arg7[%c0_34, %c0_35, %c0_36] : memref<4x8x1xf32, #tpu.memory_space<vmem>>, vector<4x8x1xf32>
      tpu.vector_store %arg7[%c0_34, %c0_35, %c0_36], %29 {strides = array<i32>} : memref<4x8x1xf32, #tpu.memory_space<vmem>>, vector<4x8x1xf32>,
      %c0_37 = arith.constant 0 : index
      %c0_38 = arith.constant 0 : index
      %c0_39 = arith.constant 0 : index
      %49 = vector.load %arg8[%c0_37, %c0_38, %c0_39] : memref<4x8x1xf32, #tpu.memory_space<vmem>>, vector<4x8x1xf32>
      %50 = tpu.reciprocal %49 {approx = true} : vector<4x8x1xf32> -> vector<4x8x1xf32>
      %c0_40 = arith.constant 0 : index
      %c0_41 = arith.constant 0 : index
      %c0_42 = arith.constant 0 : index
      %51 = vector.load %arg9[%c0_40, %c0_41, %c0_42] : memref<4x8x8xf32, #tpu.memory_space<vmem>>, vector<4x8x8xf32>
      %52 = vector.broadcast %50 : vector<4x8x1xf32> to vector<4x8x8xf32>
      %53 = arith.mulf %51, %52 : vector<4x8x8xf32>
      %c0_43 = arith.constant 0 : index
      %c0_44 = arith.constant 0 : index
      %c0_45 = arith.constant 0 : index
      %c0_46 = arith.constant 0 : index
      %54 = vector.load %arg6[%c0_43, %c0_44, %c0_45, %c0_46] : memref<1x4x8x8xf32, #tpu.memory_space<vmem>>, vector<1x4x8x8xf32>
      %55 = vector.shape_cast %54 : vector<1x4x8x8xf32> to vector<4x8x8xf32>
      %56 = vector.shape_cast %53 : vector<4x8x8xf32> to vector<1x4x8x8xf32>
      tpu.vector_store %arg6[%c0_43, %c0_44, %c0_45, %c0_46], %56 {strides = array<i32>} : memref<1x4x8x8xf32, #tpu.memory_space<vmem>>, vector<1x4x8x8xf32>,
    } else {
    }
    return
  }
  func.func @transform_0(%arg0: i32, %arg1: i32, %arg2: i32) -> (i32, i32, i32, i32) {
    %c0_i32 = arith.constant 0 : i32
    %c0_i32_0 = arith.constant 0 : i32
    %c0_i32_1 = arith.constant 0 : i32
    return %arg0, %c0_i32, %arg1, %c0_i32_0 : i32, i32, i32, i32
  }
  func.func @transform_1(%arg0: i32, %arg1: i32, %arg2: i32) -> (i32, i32, i32, i32) {
    %0 = arith.minsi %arg2, %arg1 : i32
    %c0_i32 = arith.constant 0 : i32
    %c0_i32_0 = arith.constant 0 : i32
    %c0_i32_1 = arith.constant 0 : i32
    return %arg0, %c0_i32, %0, %c0_i32_0 : i32, i32, i32, i32
  }
  func.func @transform_2(%arg0: i32, %arg1: i32, %arg2: i32) -> (i32, i32, i32, i32) {
    %0 = arith.minsi %arg2, %arg1 : i32
    %c0_i32 = arith.constant 0 : i32
    %c0_i32_0 = arith.constant 0 : i32
    %c0_i32_1 = arith.constant 0 : i32
    return %arg0, %c0_i32, %0, %c0_i32_0 : i32, i32, i32, i32
  }
  func.func @transform_3(%arg0: i32, %arg1: i32, %arg2: i32) -> (i32, i32, i32, i32) {
    %c0_i32 = arith.constant 0 : i32
    %c0_i32_0 = arith.constant 0 : i32
    %c0_i32_1 = arith.constant 0 : i32
    return %arg0, %c0_i32, %arg1, %c0_i32_0 : i32, i32, i32, i32
  }
}

</mosaic_0001>

<bundles_post_ra>
// kernel: tpu_custom_call.1
= control target key start
LH: loop header
LB: loop body
LE: loop exit
PB: predicated region body
PF: predicated region fallthrough
CT: control target
= control target key end

     0   :  { %s1784_s0 = inlined_call_operand.hbm [shape: bf16[2,4,8,8], index: 0, kind: input, shape index: {}]   ;;  %s1785_s1 = inlined_call_operand.hbm [shape: bf16[2,4,8,8], index: 1, kind: input, shape index: {}]   ;;  %s1786_s2 = inlined_call_operand.hbm [shape: bf16[2,4,8,8], index: 2, kind: input, shape index: {}]   ;;  %s1787_s3 = inlined_call_operand.hbm [shape: f32[2,4,8,8], index: 3, kind: output, shape index: {}]  }
   0x1   :  { %1793 = sst [smem:[#allocation20_spill]] %s1785_s1 }
   0x2   :  { %8 = vsyncpa [#allocation6], 0 }
   0x3   :  { %10 = vsyncpa [#allocation6 + $0x1], 0 }
   0x4   :  { %11 = vsyncpa [#allocation9], 0 }
   0x5   :  { %13 = vsyncpa [#allocation9 + $0x1], 0 }
   0x6   :  { %14 = vsyncpa [#allocation7], 0 }
   0x7   :  { %16 = vsyncpa [#allocation7 + $0x1], 0  ;;  %s1516_s12 = smov 0   ;;  %s1518_s13 = smov 0  }
   0x8   :  { %s1520_s14 = smov 0   ;;  %s1522_s15 = smov 0  }
   0x9   :  { %s1524_s16 = smov 0   ;;  %s1526_s17 = smov 0  }
   0xa LB: > { %1794 = sst [smem:[#allocation15_spill]] %s1475_s14  ;;  %s1547_s18 = sadd.s32 4294967295, %s1487_s17   ;;  %s1487_s17 = sphi %s1526_s17, %s22_s17   ;;  %s1483_s16 = sphi %s1524_s16, %s1810_s16   ;;  %s1479_s15 = sphi %s1522_s15, %s1809_s15   ;;  %s1475_s14 = sphi %s1520_s14, %s1808_s14   ;;  %s1471_s13 = sphi %s1518_s13, %s1812_s13   ;;  %s1467_s12 = sphi %s1516_s12, %s1811_s12  }
   0xb   : > { %1795 = sst [smem:[#allocation16_spill]] %s1483_s16  ;;  %s1163_s19 = sadd.s32 4294967294, %s1487_s17  }
   0xc   : > { %1796 = sst [smem:[#allocation17_spill]] %s1487_s17  ;;  %s41_s20 = sadd.s32 1, %s1483_s16 }
   0xd   : > { %s50_s21 = sadd.s32 1, %s1475_s14  ;;  %p43_p0 = scmp.ge.s32.totalorder %s41_s20, 2 }
   0xe   : > { %p57_p1 = scmp.ne.s32.totalorder %s1475_s14, %s1471_s13  ;;  %p58_p2 = scmp.eq.s32.totalorder %s1487_s17, 0 }
   0xf   : > { %p63_p3 = scmp.ne.s32.totalorder %s1471_s13, %s1467_s12  ;;  %s1814_s20 = smov (%p43_p0, %s41_s20), 0 }
  0x10   : > { %1797 = sst [smem:[#allocation18_spill]] %s1814_s20  ;;  %p1559_p4 = por %p58_p2, %p57_p1 }
  0x11   : > { %p64_p5 = scmp.eq.s32.totalorder %s1547_s18, 0  ;;  %s45_s23 = ssub.s32 %s1483_s16, %s1814_s20 }
  0x12   : > { %p153_p6 = scmp.eq.s32.totalorder %s1547_s18, 1  ;;  %p48_p7 = scmp.eq.s32.totalorder %s45_s23, 0 }
  0x13   : > { %p1567_p8 = por %p64_p5, %p63_p3  ;;  %p159_p10 = scmp.eq.s32.totalorder %s1163_s19, 1 }
  0x14   : > { %p1571_p9 = por %p153_p6, %p57_p1  ;;  %p1165_p12 = scmp.ge.s32.totalorder %s1487_s17, 2 }
  0x15   : > { %s1576_s26 = scalar_select %p48_p7, %s1475_s14, %s50_s21  }
  0x16   : > { %p1578_p11 = por %p159_p10, %p63_p3  ;;  %p1227_p13 = scmp.lt.s32.totalorder %s1487_s17, 2 }
  0x17   : > { %1801 = sst [smem:[#allocation19_spill]] %s1576_s26  ;;  %s179_s28 = sand.u32 1, %s1475_s14  }
  0x18   : > { %s1585_s29 = sshll.u32 %s179_s28, 4  ;;  %s1201_s30 = sshll.u32 %s1483_s16, 4 }
  0x19   : > { %p1590_p0 = pnand %p1227_p13, %p1559_p4  ;;  %s202_s5 = sand.u32 1, %s1487_s17  }
  0x1a   : > { %s1804_s1 = sld [smem:[#allocation20_spill]]  ;;  %s206_s10 = scalar_lea.vmem [#allocation8], %s1585_s29 }
  0x1b   : > { %s217_s11 = sshll.u32 %s206_s10, 4  ;;  %s203_s19 = scalar_lea.sflag [#allocation9], %s202_s5  ;;  %s218_s11 = int_to_ptr.vmem [resolvable:$true] %s217_s11 }
  0x1c   : > { %s1489_s21 = smov 64   ;;  %s1490_s22 = smov 4  }
  0x1d   : > { %p1175_p1 = scmp.ge.s32.totalorder %s1487_s17, 1  ;;  %p250_p2 = scmp.lt.s32.totalorder %s1487_s17, 3 }
  0x1e   : > { %s180_s5 = scalar_lea.sflag [#allocation6], %s179_s28  ;;  %s239_s16 = scalar_lea.hbm %s1786_s2, %s1201_s30 }
  0x1f   : > { %p1603_p3 = pnand %p1175_p1, %p250_p2  ;;  %s240_s26 = sshll.u32 %s239_s16, 4  ;;  %s241_s26 = int_to_ptr.hbm [resolvable:$true] %s240_s26 }
  0x20   : > { %s214_s8 = scalar_lea.hbm %s1804_s1, %s1201_s30  ;;  %s183_s1 = scalar_lea.vmem [#allocation5], %s1585_s29 }
  0x21   : > { %s215_s9 = sshll.u32 %s214_s8, 4  ;;  %s189_s8 = scalar_lea.hbm %s1784_s0, %s1201_s30  ;;  %s216_s9 = int_to_ptr.hbm [resolvable:$true] %s215_s9 }
  0x22   : > { %1219 = dma.hbm_to_vmem [thread:$0]  (!%p1590_p0), %s216_s9, 256, %s218_s11, %s203_s19, %s1489_s21, %s1489_s21, %s1490_s22  }
  0x23   : > { %s190_s10 = sshll.u32 %s189_s8, 4  ;;  %s192_s20 = sshll.u32 %s183_s1, 4  ;;  %s191_s10 = int_to_ptr.hbm [resolvable:$true] %s190_s10  ;;  %s193_s20 = int_to_ptr.vmem [resolvable:$true] %s192_s20 }
  0x24   : > { %1216 = dma.hbm_to_vmem [thread:$0]  (!%p1590_p0), %s191_s10, 256, %s193_s20, %s180_s5, %s1489_s21, %s1489_s21, %s1490_s22  }
  0x25   : > { %s231_s14 = scalar_lea.vmem [#allocation10], %s1585_s29  ;;  %254 = sbr.rel (%p1603_p3) target bundleno = 733 (0x2dd), region = 32 }
  0x26   : > { %s242_s17 = sshll.u32 %s231_s14, 4  ;;  %s1622_s1 = sand.u32 (!%p1603_p3), 1, %s1471_s13   ;;  %s243_s17 = int_to_ptr.vmem [resolvable:$true] %s242_s17 }
  0x27   : > { %1222 = dma.hbm_to_vmem [thread:$0]  (!%p1590_p0), %s241_s26, 256, %s243_s17, %s203_s19, %s1489_s21, %s1489_s21, %s1490_s22  }
  0x28   : > { %s1625_s20 = sshll.u32 (!%p1603_p3), %s1622_s1, 4  ;;  %s257_s28 = scalar_lea.sflag (!%p1603_p3), [#allocation6], %s1622_s1 }
  0x29   : > { %s260_s16 = scalar_lea.vmem (!%p1603_p3), [#allocation5], %s1625_s20 }
  0x2a   : > { %1454 = dma.done.wait (%p1567_p8), %s257_s28, 256  }
  0x2b   : > { %1456 = vsyncadd (%p1567_p8), %s257_s28, 4294967040  ;;  %s266_s14 = sand.u32 1, %s1547_s18   ;;  %s270_s26 = scalar_lea.vmem [#allocation8], %s1625_s20 }
  0x2c   : > { %s267_s17 = scalar_lea.sflag [#allocation9], %s266_s14 }
  0x2d   : > { %1458 = dma.done.wait (%p1567_p8), %s267_s17, 512  }
  0x2e   : > { %1460 = vsyncadd (%p1567_p8), %s267_s17, 4294966784  ;;  %vm332_vm0 = vcmask 64512   ;;  %v656_v0 = vld [vmem:[%s270_s26] sm:$0xf]  ;;  %v658_v1 = vld [vmem:[%s270_s26 + $0x8] sm:$0xf]  ;;  %v745_v13 = vlaneseq }
  0x2f   : > { %v669_v2 = vsel %vm332_vm0, %v656_v0, 0  ;;  %v707_v3 = vsel %vm332_vm0, %v658_v1, 0  ;;  %v657_v4 = vld [vmem:[%s270_s26 + $0x4] sm:$0xf]  ;;  %v659_v6 = vld [vmem:[%s270_s26 + $0xc] sm:$0xf] }
  0x30   : > { %678 = vmatpush.bf16.xpose.msra.mxu0 %v669_v2  ;;  %716 = vmatpush.bf16.xpose.msra.mxu2 %v707_v3  ;;  %v688_v5 = vsel %vm332_vm0, %v657_v4, 0  ;;  %v726_v7 = vsel %vm332_vm0, %v659_v6, 0  ;;  %v652_v8 = vld [vmem:[%s260_s16] sm:$0xf]  ;;  %v654_v9 = vld [vmem:[%s260_s16 + $0x8] sm:$0xf] }
  0x31   : > { %697 = vmatpush.bf16.xpose.msra.mxu1 %v688_v5  ;;  %735 = vmatpush.bf16.xpose.msra.mxu3 %v726_v7  ;;  %v653_v10 = vld [vmem:[%s260_s16 + $0x4] sm:$0xf]  ;;  %v655_v11 = vld [vmem:[%s260_s16 + $0xc] sm:$0xf]  ;;  %vm323_vm1 = vcmask 7168   ;;  %v746_v14 = vshrl.u32 %v745_v13, 7 }
  0x32   : > { %v1491_v12 = vmov -1e+30   ;;  %v748_v15 = vand.u32 127, %v745_v13  ;;  %v1492_v36 = vmov 0   ;;  %v1493_v37 = vmov 0.0   ;;  %s280_s18 = scalar_lea.vmem [#allocation10], %s1625_s20 }
  0x33   : > { %324 = vst.msk [vmem:[#allocation2] sm:$0xff] %vm323_vm1, %v1491_v12  ;;  %1285 = vset.pattern.permute.xlu0 %v1492_v36  ;;  %1284 = vset.pattern.permute.xlu2 %v1492_v36  ;;  %v662_v54 = vld [vmem:[%s280_s18 + $0x8] sm:$0xf]  ;;  %vm856_vm3 = vcmask 1043456   ;;  %v663_v56 = vld [vmem:[%s280_s18 + $0xc] sm:$0xf] }
  0x34   : > { %325 = vst.msk [vmem:[#allocation2 + $0x8] sm:$0xff] %vm323_vm1, %v1491_v12  ;;  %vm749_vm2 = vcmp.le.s32.totalorder %v748_v15, %v746_v14  ;;  %1286 = vset.pattern.permute.xlu1 %v1492_v36  ;;  %v896_v55 = vsel %vm856_vm3, %v662_v54, 0  ;;  %v915_v57 = vsel %vm856_vm3, %v663_v56, 0  ;;  %v660_v58 = vld [vmem:[%s280_s18] sm:$0xf]  ;;  %s1179_s24 = sshll.u32 %s1622_s1, 5 }
  0x35   : > { %326 = vst.msk [vmem:[#allocation2 + $0x10] sm:$0xff] %vm323_vm1, %v1491_v12  ;;  %v858_v59 = vsel %vm856_vm3, %v660_v58, 0  ;;  %v661_v61 = vld [vmem:[%s280_s18 + $0x4] sm:$0xf]  ;;  %s313_s29 = scalar_lea.vmem [#allocation11], %s1179_s24  ;;  %s1204_s30 = sshll.u32 %s1479_s15, 5 }
  0x36   : > { %327 = vst.msk [vmem:[#allocation2 + $0x18] sm:$0xff] %vm323_vm1, %v1491_v12  ;;  %v877_v63 = vsel %vm856_vm3, %v661_v61, 0  ;;  %s1023_s21 = scalar_lea.hbm %s1787_s3, %s1204_s30  ;;  %s1024_s22 = sshll.u32 %s313_s29, 4  ;;  %s1025_s22 = int_to_ptr.vmem [resolvable:$true] %s1024_s22 }
  0x37   : > { %1188 = vmatmul.msk.bf16.vlgmr.msra.gmra.mxu0 %vm332_vm0, %v652_v8  ;;  %1190 = vmatmul.msk.bf16.vlgmr.msra.gmra.mxu2 %vm332_vm0, %v654_v9  ;;  %330 = vst.msk [vmem:[#allocation3 + $0x10] sm:$0xff] %vm323_vm1, %v1493_v37  ;;  %s1026_s23 = sshll.u32 %s1023_s21, 4  ;;  %s1011_s6 = scalar_lea.sflag [#allocation7], %s1622_s1  ;;  %s1027_s23 = int_to_ptr.hbm [resolvable:$true] %s1026_s23 }
  0x38   : > { %1189 = vmatmul.msk.bf16.vlgmr.msra.gmra.mxu1 %vm332_vm0, %v653_v10  ;;  %1191 = vmatmul.msk.bf16.vlgmr.msra.gmra.mxu3 %vm332_vm0, %v655_v11  ;;  %328 = vst.msk [vmem:[#allocation3] sm:$0xff] %vm323_vm1, %v1493_v37  ;;  %s1415_s7 = sshra.s32 %s1027_s23, 4  ;;  %s1421_s5 = scalar_lea.hbm %s1787_s3, 64  ;;  %s1416_s7 = int_to_ptr.hbm [resolvable:$true] %s1415_s7 }
  0x39   : > { %329 = vst.msk [vmem:[#allocation3 + $0x8] sm:$0xff] %vm323_vm1, %v1493_v37  ;;  %905 = vmatpush.bf16.msrb.mxu2 %v896_v55  ;;  %924 = vmatpush.bf16.msrb.mxu3 %v915_v57  ;;  %s1417_s8 = scalar_lea.hbm %s1416_s7, 32  ;;  %p1422_p7 = scmp.lt.s32.totalorder %s1416_s7, %s1787_s3 }
  0x3a   : > { %331 = vst.msk [vmem:[#allocation3 + $0x18] sm:$0xff] %vm323_vm1, %v1493_v37  ;;  %v1679_v38 = vld [vmem:[#allocation2] sm:$0xff]  ;;  %867 = vmatpush.bf16.msrb.mxu0 %v858_v59  ;;  %886 = vmatpush.bf16.msrb.mxu1 %v877_v63  ;;  %p1418_p4 = scmp.ne.s32.totalorder %s1416_s7, %s1417_s8  ;;  %p1423_p8 = scmp.lt.s32.totalorder %s1421_s5, %s1417_s8 }
  0x3b   : > { %333 = vst.msk [vmem:[#allocation4] sm:$0xff] %vm332_vm0, %v1493_v37  ;;  %v1691_v44 = vld [vmem:[#allocation2 + $0x8] sm:$0xff] }
  0x3c   : > { %334 = vst.msk [vmem:[#allocation4 + $0x8] sm:$0xff] %vm332_vm0, %v1493_v37  ;;  %v1689_v42 = vld [vmem:[#allocation2 + $0x10] sm:$0xff]  ;;  %p1419_p5 = pnand %p1418_p4, %p1571_p9  ;;  %p1424_p10 = por %p1423_p8, %p1422_p7 }
  0x3d   : > { %335 = vst.msk [vmem:[#allocation4 + $0x10] sm:$0xff] %vm332_vm0, %v1493_v37  ;;  %v1704_v50 = vld [vmem:[#allocation2 + $0x18] sm:$0xff] }
  0x3e   : > { %336 = vst.msk [vmem:[#allocation4 + $0x18] sm:$0xff] %vm332_vm0, %v1493_v37  ;;  %p1420_p6 = pneg %p1419_p5 }
  0x40   : > { %p1425_p13 = pnand %p1424_p10, %p1420_p6 }
  0xb4   : > { %v680_v16 = vpop.f32.mrf.mxu0 }
  0xb5   : > { %v741_v17 = vmul.f32 0.17677669, %v680_v16  ;;  %v699_v18 = vpop.f32.mrf.mxu1 }
  0xb6   : > { %v742_v20 = vmul.f32 0.17677669, %v699_v18 }
  0xb7   : > { %v1652_v19 = vsel %vm749_vm2, %v741_v17, -1e+30 }
  0xb8   : > { %v760_v21 = vsel %vm332_vm0, %v1652_v19, -inf  ;;  %v1657_v24 = vsel %vm749_vm2, %v742_v20, -1e+30 }
  0xb9   : > { %761 = vmax.xlane.f32.xlu1 %v760_v21  ;;  %v763_v31 = vsel %vm332_vm0, %v1657_v24, -inf }
  0xba   : > { %v718_v22 = vpop.f32.mrf.mxu2 }
  0xbb   : > { %v743_v23 = vmul.f32 0.17677669, %v718_v22  ;;  %v737_v26 = vpop.f32.mrf.mxu3 }
  0xbc   : > { %v682_v25 = vpop.f32.mrf.mxu0  ;;  %v744_v28 = vmul.f32 0.17677669, %v737_v26 }
  0xbd   : > { %v1660_v27 = vsel %vm749_vm2, %v743_v23, -1e+30  ;;  %v701_v29 = vpop.f32.mrf.mxu1 }
  0xbe   : > { %v766_v30 = vsel %vm332_vm0, %v1660_v27, -inf  ;;  %v1667_v32 = vsel %vm749_vm2, %v744_v28, -1e+30  ;;  %v822_v29 = vld [vmem:[#allocation3 + $0x10] sm:$0xff] }
  0xbf   : > { %767 = vmax.xlane.f32.xlu0 %v766_v30  ;;  %v769_v34 = vsel %vm332_vm0, %v1667_v32, -inf }
  0xc1   : > { %764 = vmax.xlane.f32.xlu1 %v763_v31 }
  0xc2   : > { %v720_v33 = vpop.f32.mrf.mxu2 }
  0xc3   : > { %v739_v35 = vpop.f32.mrf.mxu3 }
  0xc4   : > { %v820_v35 = vld [vmem:[#allocation3] sm:$0xff] }
  0xc7   : > { %770 = vmax.xlane.f32.xlu0 %v769_v34 }
 0x12c   : > { %v762_v39 = vpop.xlane.xlu1 %761 }
 0x12d   : > { %v1682_v40 = vmax.f32 %v1679_v38, %v762_v39 }
 0x12f   : > { %v776_v41 = vsub.f32 %v1679_v38, %v1682_v40  ;;  %966 = vst.msk [vmem:[#allocation2] sm:$0xff] %vm323_vm1, %v1682_v40  ;;  %790 = vperm.xlu0 %1285, %v1682_v40  }
 0x131   : > { %v780_v21 = vmul.f32 1.442695, %v776_v41  ;;  %v821_v41 = vld [vmem:[#allocation3 + $0x8] sm:$0xff] }
 0x132   : > { %v768_v43 = vpop.xlane.xlu0 %767 }
 0x133   : > { %v1694_v45 = vmax.f32 %v1689_v42, %v768_v43 }
 0x134   : > { %v765_v46 = vpop.xlane.xlu1 %764 }
 0x135   : > { %v778_v47 = vsub.f32 %v1689_v42, %v1694_v45  ;;  %968 = vst.msk [vmem:[#allocation2 + $0x10] sm:$0xff] %vm323_vm1, %v1694_v45  ;;  %v773_v48 = vmax.f32 %v1691_v44, %v765_v46  ;;  %800 = vperm.xlu2 %1284, %v1694_v45   ;;  %v930_v42 = vld [vmem:[#allocation4] sm:$0xff] }
 0x137   : > { %v777_v49 = vsub.f32 %v1691_v44, %v773_v48  ;;  %967 = vst.msk [vmem:[#allocation2 + $0x8] sm:$0xff] %vm323_vm1, %v773_v48  ;;  %795 = vperm.xlu1 %1286, %v773_v48   ;;  %v784_v22 = vmul.f32 1.442695, %v778_v47 }
 0x139   : > { %v782_v23 = vmul.f32 1.442695, %v777_v49 }
 0x13a   : > { %v771_v51 = vpop.xlane.xlu0 %770 }
 0x13b   : > { %v1707_v52 = vmax.f32 %v1704_v50, %v771_v51 }
 0x13d   : > { %v779_v53 = vsub.f32 %v1704_v50, %v1707_v52  ;;  %969 = vst.msk [vmem:[#allocation2 + $0x18] sm:$0xff] %vm323_vm1, %v1707_v52  ;;  %805 = vperm.xlu2 %1284, %v1707_v52  }
 0x13f   : > { %v786_v28 = vmul.f32 1.442695, %v779_v53  ;;  %v932_v53 = vld [vmem:[#allocation4 + $0x10] sm:$0xff] }
 0x18f   : > { %v801_v60 = vpop.permute.xlu2 %800 }
 0x190   : > { %v810_v62 = vsub.f32 %v1660_v27, %v801_v60 }
 0x192   : > { %v816_v0 = vmul.f32 1.442695, %v810_v62 }
 0x194   : > { %1287 = vpow2.f32 %v816_v0  ;;  %v931_v0 = vld [vmem:[#allocation4 + $0x8] sm:$0xff] }
 0x197   : > { %v806_v1 = vpop.permute.xlu2 %805 }
 0x198   : > { %v811_v2 = vsub.f32 %v1667_v32, %v806_v1 }
 0x19a   : > { %v1288_v3 = vpop.eup %1287  ;;  %v818_v4 = vmul.f32 1.442695, %v811_v2 }
 0x19b   : > { %v834_v5 = vsel %vm332_vm0, %v1288_v3, 0.0  ;;  %v851_v6 = vpack.c.bf16 %v1288_v3, %v1288_v3 }
 0x19c   : > { %1289 = vpow2.f32 %v818_v4  ;;  %835 = vadd.xlane.f32.xlu0 %v834_v5  ;;  %v823_v4 = vld [vmem:[#allocation3 + $0x18] sm:$0xff] }
 0x19d   : > { %1194 = vmatmul.msk.bf16.vlgmr.msrb.gmra.mxu2 %vm332_vm0, %v851_v6 }
 0x1a1   : > { %v791_v7 = vpop.permute.xlu0 %790 }
 0x1a2   : > { %v1290_v8 = vpop.eup %1289  ;;  %v808_v9 = vsub.f32 %v1652_v19, %v791_v7 }
 0x1a3   : > { %v852_v10 = vpack.c.bf16 %v1290_v8, %v1290_v8  ;;  %v837_v27 = vsel %vm332_vm0, %v1290_v8, 0.0  ;;  %v933_v8 = vld [vmem:[#allocation4 + $0x18] sm:$0xff] }
 0x1a4   : > { %v812_v11 = vmul.f32 1.442695, %v808_v9 }
 0x1a5   : > { %1195 = vmatmul.msk.bf16.vlgmr.msrb.gmra.mxu3 %vm332_vm0, %v852_v10 }
 0x1a6   : > { %1291 = vpow2.f32 %v812_v11 }
 0x1a9   : > { %v796_v12 = vpop.permute.xlu1 %795 }
 0x1aa   : > { %v809_v13 = vsub.f32 %v1657_v24, %v796_v12 }
 0x1ac   : > { %v1292_v14 = vpop.eup %1291  ;;  %v814_v15 = vmul.f32 1.442695, %v809_v13 }
 0x1ad   : > { %v828_v16 = vsel %vm332_vm0, %v1292_v14, 0.0  ;;  %v849_v17 = vpack.c.bf16 %v1292_v14, %v1292_v14 }
 0x1ae   : > { %1293 = vpow2.f32 %v814_v15  ;;  %829 = vadd.xlane.f32.xlu2 %v828_v16 }
 0x1af   : > { %1192 = vmatmul.msk.bf16.vlgmr.msrb.gmra.mxu0 %vm332_vm0, %v849_v17  ;;  %1295 = vpow2.f32 %v780_v21 }
 0x1b0   : > { %1297 = vpow2.f32 %v784_v22 }
 0x1b1   : > { %1299 = vpow2.f32 %v782_v23 }
 0x1b2   : > { %1301 = vpow2.f32 %v786_v28 }
 0x1b4   : > { %v1294_v18 = vpop.eup %1293 }
 0x1b5   : > { %v831_v19 = vsel %vm332_vm0, %v1294_v18, 0.0  ;;  %v850_v20 = vpack.c.bf16 %v1294_v18, %v1294_v18  ;;  %v1296_v24 = vpop.eup %1295 }
 0x1b6   : > { %832 = vadd.xlane.f32.xlu1 %v831_v19  ;;  %v1298_v25 = vpop.eup %1297  ;;  %v824_v38 = vmul.f32 %v1296_v24, %v820_v35 }
 0x1b7   : > { %1193 = vmatmul.msk.bf16.vlgmr.msrb.gmra.mxu1 %vm332_vm0, %v850_v20  ;;  %v1300_v26 = vpop.eup %1299  ;;  %v826_v31 = vmul.f32 %v1298_v25, %v822_v29 }
 0x1b8   : > { %v1302_v30 = vpop.eup %1301  ;;  %v825_v45 = vmul.f32 %v1300_v26, %v821_v41 }
 0x1b9   : > { %v827_v5 = vmul.f32 %v1302_v30, %v823_v4 }
 0x1c6   : > { %936 = vperm.xlu2 %1284, %v1296_v24  }
 0x1ce   : > { %946 = vperm.xlu2 %1284, %v1298_v25  }
 0x1cf   : > { %941 = vperm.xlu1 %1286, %v1300_v26  }
 0x1f7   : > { %838 = vadd.xlane.f32.xlu2 %v837_v27 }
 0x20f   : > { %v836_v32 = vpop.xlane.xlu0 %835  ;;  %951 = vperm.xlu2 %1284, %v1302_v30  }
 0x210   : > { %v842_v33 = vadd.f32 %v836_v32, %v826_v31 }
 0x212   : > { %847 = vst.msk [vmem:[#allocation3 + $0x10] sm:$0xff] %vm323_vm1, %v842_v33 }
 0x219   : > { %v972_v34 = vld [vmem:[#allocation3 + $0x10] sm:$0xff] }
 0x21a   : > { %1303 = vrcp.f32 %v972_v34 }
 0x220   : > { %v1304_v36 = vpop.eup %1303  ;;  %v907_v37 = vpop.f32.mrf.mxu2 }
 0x221   : > { %v830_v39 = vpop.xlane.xlu2 %829  ;;  %994 = vperm.xlu1 %1286, %v1304_v36  }
 0x222   : > { %v840_v40 = vadd.f32 %v830_v39, %v824_v38 }
 0x224   : > { %845 = vst.msk [vmem:[#allocation3] sm:$0xff] %vm323_vm1, %v840_v40 }
 0x228   : > { %v909_v43 = vpop.f32.mrf.mxu2  ;;  %v926_v44 = vpop.f32.mrf.mxu3 }
 0x229   : > { %v833_v46 = vpop.xlane.xlu1 %832  ;;  %v937_v47 = vpop.permute.xlu2 %936 }
 0x22a   : > { %v841_v48 = vadd.f32 %v833_v46, %v825_v45  ;;  %v954_v49 = vmul.f32 %v937_v47, %v930_v42 }
 0x22b   : > { %v970_v50 = vld [vmem:[#allocation3] sm:$0xff] }
 0x22c   : > { %846 = vst.msk [vmem:[#allocation3 + $0x8] sm:$0xff] %vm323_vm1, %v841_v48  ;;  %v869_v51 = vpop.f32.mrf.mxu0  ;;  %1305 = vrcp.f32 %v970_v50 }
 0x22d   : > { %v958_v52 = vadd.f32 %v954_v49, %v869_v51 }
 0x22f   : > { %962 = vst.msk [vmem:[#allocation4] sm:$0xff] %vm332_vm0, %v958_v52 }
 0x230   : > { %v928_v54 = vpop.f32.mrf.mxu3 }
 0x231   : > { %v947_v55 = vpop.permute.xlu2 %946 }
 0x232   : > { %v1306_v56 = vpop.eup %1305  ;;  %v956_v57 = vmul.f32 %v947_v55, %v932_v53 }
 0x233   : > { %984 = vperm.xlu0 %1285, %v1306_v56   ;;  %v971_v58 = vld [vmem:[#allocation3 + $0x8] sm:$0xff] }
 0x234   : > { %v960_v59 = vadd.f32 %v956_v57, %v907_v37  ;;  %v871_v60 = vpop.f32.mrf.mxu0  ;;  %v888_v61 = vpop.f32.mrf.mxu1  ;;  %1307 = vrcp.f32 %v971_v58 }
 0x236   : > { %964 = vst.msk [vmem:[#allocation4 + $0x10] sm:$0xff] %vm332_vm0, %v960_v59  ;;  %v978_v20 = vld [vmem:[#allocation4] sm:$0xff] }
 0x23a   : > { %v1308_v62 = vpop.eup %1307 }
 0x23b   : > { %989 = vperm.xlu2 %1284, %v1308_v62  }
 0x23c   : > { %v890_v63 = vpop.f32.mrf.mxu1 }
 0x23d   : > { %v980_v15 = vld [vmem:[#allocation4 + $0x10] sm:$0xff] }
 0x241   : > { %v942_v1 = vpop.permute.xlu1 %941 }
 0x242   : > { %v955_v2 = vmul.f32 %v942_v1, %v931_v0 }
 0x244   : > { %v959_v3 = vadd.f32 %v955_v2, %v888_v61 }
 0x246   : > { %963 = vst.msk [vmem:[#allocation4 + $0x8] sm:$0xff] %vm332_vm0, %v959_v3 }
 0x24d   : > { %v979_v17 = vld [vmem:[#allocation4 + $0x8] sm:$0xff] }
 0x26a   : > { %v839_v6 = vpop.xlane.xlu2 %838 }
 0x26b   : > { %v843_v7 = vadd.f32 %v839_v6, %v827_v5 }
 0x26d   : > { %848 = vst.msk [vmem:[#allocation3 + $0x18] sm:$0xff] %vm323_vm1, %v843_v7 }
 0x272   : > { %v952_v9 = vpop.permute.xlu2 %951 }
 0x273   : > { %v957_v10 = vmul.f32 %v952_v9, %v933_v8 }
 0x274   : > { %v973_v11 = vld [vmem:[#allocation3 + $0x18] sm:$0xff] }
 0x275   : > { %v961_v12 = vadd.f32 %v957_v10, %v926_v44  ;;  %1309 = vrcp.f32 %v973_v11 }
 0x277   : > { %965 = vst.msk [vmem:[#allocation4 + $0x18] sm:$0xff] %vm332_vm0, %v961_v12 }
 0x27b   : > { %v1310_v13 = vpop.eup %1309 }
 0x27c   : > { %999 = vperm.xlu2 %1284, %v1310_v13  }
 0x27e   : > { %v981_v23 = vld [vmem:[#allocation4 + $0x18] sm:$0xff] }
 0x293   : > { %v995_v14 = vpop.permute.xlu1 %994 }
 0x294   : > { %v1004_v16 = vmul.f32 %v995_v14, %v980_v15 }
 0x295   : > { %v990_v18 = vpop.permute.xlu2 %989 }
 0x296   : > { %1008 = vst.msk [vmem:[%s313_s29 + $0x10] sm:$0xff] %vm332_vm0, %v1004_v16  ;;  %v1003_v19 = vmul.f32 %v990_v18, %v979_v17 }
 0x298   : > { %1007 = vst.msk [vmem:[%s313_s29 + $0x8] sm:$0xff] %vm332_vm0, %v1003_v19 }
 0x2a5   : > { %v985_v21 = vpop.permute.xlu0 %984 }
 0x2a6   : > { %v1002_v22 = vmul.f32 %v985_v21, %v978_v20 }
 0x2a8   : > { %1006 = vst.msk [vmem:[%s313_s29] sm:$0xff] %vm332_vm0, %v1002_v22 }
 0x2d6   : > { %v1000_v24 = vpop.permute.xlu2 %999 }
 0x2d7   : > { %v1005_v25 = vmul.f32 %v1000_v24, %v981_v23 }
 0x2d9   : > { %1009 = vst.msk [vmem:[%s313_s29 + $0x18] sm:$0xff] %vm332_vm0, %v1005_v25 }
 0x2da   : > { %1428 = shalt.err (!%p1425_p13)
}
 0x2db   : > { %s1494_s1 = smov 128   ;;  %s1495_s20 = smov 8  }
 0x2dc   : > { %1211 = dma.vmem_to_hbm [thread:$0]  (%p1571_p9), %s1025_s22, 512, %s1027_s23, %s1011_s6, %s1494_s1, %s1494_s1, %s1495_s20  }
 0x2dd PF: > { %s1806_s28 = sld [smem:[#allocation17_spill]]  ;;  %s1041_s16 = sand.u32 1, %s1467_s12  }
 0x2de   : > { %p1224_p0 = pnand %p1165_p12, %p1578_p11  ;;  %s1042_s14 = scalar_lea.sflag [#allocation7], %s1041_s16 }
 0x2e0   : > { %p1225_p1 = pneg %p1224_p0 }
 0x2e2   : > { %1462 = dma.done.wait (%p1225_p1), %s1042_s14, 512  }
 0x2e3   : > { %1464 = vsyncadd (%p1225_p1), %s1042_s14, 4294966784  ;;  %s22_s17 = sadd.s32 1, %s1806_s28   ;;  %s1807_s26 = sld [smem:[#allocation15_spill]] }
 0x2e4   : > { %p19_p2 = scmp.ge.s32.totalorder %s22_s17, 4   ;;  %s1808_s14 = sld [smem:[#allocation19_spill]] }
 0x2e5   : > { %s1809_s15 = sld [smem:[#allocation16_spill]]  ;;  %s1811_s12 = smov %s1471_s13 }
 0x2e6   : > { %s1810_s16 = sld [smem:[#allocation18_spill]]  ;;  %21 = sbr.rel (!%p19_p2) target bundleno = 10 (0xa), region = 113 }
 0x2e9   : > { %s1812_s13 = smov %s1807_s26 }
 0x2eb   :  { %1048 = vsyncpa [#allocation6], 1 }
 0x2ec   :  { %1050 = vsyncpa [#allocation6 + $0x1], 1 }
 0x2ed   :  { %1051 = vsyncpa [#allocation9], 1 }
 0x2ee   :  { %1053 = vsyncpa [#allocation9 + $0x1], 1 }
 0x2ef   :  { %1054 = vsyncpa [#allocation7], 1 }
 0x2f0   :  { %1056 = vsyncpa [#allocation7 + $0x1], 1 }

</bundles_post_ra>
